<compile_context>
chip_gen: v5e
topology: v5e:2x2
jax: 0.10.0
libtpu: 0.0.40
codegen_flags: <defaults>
</compile_context>

<pallas_src>
import jax
import jax.numpy as jnp
from jax.experimental import pallas as pl
from jax.experimental.pallas import tpu as pltpu


def _round_up(x, m):
    return (x + m - 1) // m * m


def _pad2(a, rows, cols):
    return jnp.pad(a, ((0, rows - a.shape[0]), (0, cols - a.shape[1])))


def _accumulate(adj_ref, x_ref, acc_ref):
    """acc += A_tile @ x_tile  (bf16 inputs, f32 accumulation)."""
    k = pl.program_id(1)
    tk = adj_ref.shape[1]

    @pl.when(k == 0)
    def _():
        acc_ref[...] = jnp.zeros_like(acc_ref)

    start = pl.multiple_of(k * tk, tk)               # x is fully resident; slice k-th chunk
    acc_ref[...] += jnp.dot(adj_ref[...], x_ref[pl.ds(start, tk), :],
                            preferred_element_type=jnp.float32)


def _gcn_proj_first_kernel(adj_ref, x_ref, norm_ref, bias_ref, out_ref, acc_ref):
    """x = (feat * norm) @ W precomputed in the wrapper; rst = A @ x."""
    _accumulate(adj_ref, x_ref, acc_ref)

    @pl.when(pl.program_id(1) == pl.num_programs(1) - 1)
    def _():
        rst = acc_ref[...] * norm_ref[...] + bias_ref[...]
        # TODO(synk): self._activation is None in this config; apply here if supplied.
        out_ref[...] = rst.astype(out_ref.dtype)


def _gcn_agg_first_kernel(adj_ref, x_ref, w_ref, norm_ref, bias_ref, out_ref, acc_ref):
    """x = feat * norm; aggregate A @ x, then project by W in the epilogue."""
    _accumulate(adj_ref, x_ref, acc_ref)

    @pl.when(pl.program_id(1) == pl.num_programs(1) - 1)
    def _():
        rst = jnp.dot(acc_ref[...], w_ref[...], preferred_element_type=jnp.float32)
        rst = rst * norm_ref[...] + bias_ref[...]
        out_ref[...] = rst.astype(out_ref.dtype)


def graph_conv(adj, feat, weight, bias, *, tm=256, tk=512):
    """Pallas GraphConv forward.

    adj:(N,N) with A[dst,src] in {0,1}; feat:(N,Fin); weight:(Fin,Fout); bias:(Fout,)
    tm: dst-row tile (multiple of 8); tk: src/contraction tile (multiple of 128).
    """
    n, in_feats = feat.shape
    out_feats = weight.shape[1]
    proj_first = in_feats > out_feats

    adj = adj.astype(jnp.float32)
    feat = feat.astype(jnp.float32)
    weight = weight.astype(jnp.float32)
    bias = bias.astype(jnp.float32)

    # --- hoisted prepass (wrapper side): degree norm, and feature projection
    # --- when in_feats > out_feats (avoids per-dst-tile recomputation).
    deg = jnp.sum(adj, axis=1, keepdims=True)                  # in-degree (N, 1)
    norm = jax.lax.rsqrt(jnp.maximum(deg, 1.0))                # clamp(min=1) ** -0.5
    feat_n = feat * norm
    x = feat_n @ weight if proj_first else feat_n              # (N, C)
    c = x.shape[1]

    # --- padding: lane-dense channels, tile-aligned node dims.
    tm = min(tm, _round_up(n, 128))
    tk = min(tk, _round_up(n, 128))
    assert tm % 8 == 0 and tk % 128 == 0, "tm must be a multiple of 8, tk of 128"
    n_m = _round_up(n, tm)                                     # padded dst dim
    n_k = _round_up(n, tk)                                     # padded src dim
    c_p = _round_up(c, 128)
    fout_p = _round_up(out_feats, 128)

    adj_p = _pad2(adj, n_m, n_k).astype(jnp.bfloat16)          # 0/1 exact in bf16
    x_p = _pad2(x, n_k, c_p).astype(jnp.bfloat16)
    norm_p = _pad2(norm, n_m, 1)
    bias_p = jnp.pad(bias, (0, fout_p - out_feats)).reshape(1, fout_p)

    grid = (n_m // tm, n_k // tk)

    adj_spec = pl.BlockSpec((tm, tk), lambda i, k: (i, k))     # streamed
    x_spec = pl.BlockSpec((n_k, c_p), lambda i, k: (0, 0))     # pinned fully resident
    norm_spec = pl.BlockSpec((tm, 1), lambda i, k: (i, 0))
    bias_spec = pl.BlockSpec((1, fout_p), lambda i, k: (0, 0))
    out_spec = pl.BlockSpec((tm, fout_p), lambda i, k: (i, 0)) # resident across k

    # NOTE: default tiles stay well inside the default scoped-VMEM limit on
    # v5e/v6e/v7x; only raise vmem_limit_bytes (leaving headroom below v7x's
    # 64 MiB physical VMEM per TensorCore) if tm/tk are grown much larger.
    compiler_params = pltpu.CompilerParams(
        dimension_semantics=("parallel", "arbitrary"))

    if proj_first:
        out_p = pl.pallas_call(
            _gcn_proj_first_kernel,
            out_shape=jax.ShapeDtypeStruct((n_m, fout_p), feat.dtype),
            grid=grid,
            in_specs=[adj_spec, x_spec, norm_spec, bias_spec],
            out_specs=out_spec,
            scratch_shapes=[pltpu.VMEM((tm, fout_p), jnp.float32)],
            compiler_params=compiler_params,
        )(adj_p, x_p, norm_p, bias_p)
    else:
        w_p = _pad2(weight, c_p, fout_p)                       # small; kept f32
        w_spec = pl.BlockSpec((c_p, fout_p), lambda i, k: (0, 0))
        out_p = pl.pallas_call(
            _gcn_agg_first_kernel,
            out_shape=jax.ShapeDtypeStruct((n_m, fout_p), feat.dtype),
            grid=grid,
            in_specs=[adj_spec, x_spec, w_spec, norm_spec, bias_spec],
            out_specs=out_spec,
            scratch_shapes=[pltpu.VMEM((tm, c_p), jnp.float32)],
            compiler_params=compiler_params,
        )(adj_p, x_p, w_p, norm_p, bias_p)

    return out_p[:n, :out_feats]


def graph_conv_ref(adj, feat, weight, bias):
    """Pure-JAX f32 reference mirroring the PyTorch forward."""
    deg = jnp.sum(adj, axis=1, keepdims=True)
    norm = jnp.power(jnp.maximum(deg, 1.0), -0.5)
    feat = feat * norm
    if feat.shape[1] > weight.shape[1]:
        rst = adj @ (feat @ weight)
    else:
        rst = (adj @ feat) @ weight
    return rst * norm + bias[None, :]


if __name__ == "__main__":
    key = jax.random.PRNGKey(0)

    # (name, N, Fin, Fout): covers both branches and a non-tile-aligned N.
    configs = [
        ("project-then-aggregate", 300, 64, 32),   # in_feats >  out_feats
        ("aggregate-then-project", 256, 16, 64),   # in_feats <= out_feats
    ]

    for name, n, fin, fout in configs:
        key, k_adj, k_feat, k_w, k_b = jax.random.split(key, 5)
        adj = (jax.random.uniform(k_adj, (n, n)) < 0.1).astype(jnp.float32)
        feat = jax.random.normal(k_feat, (n, fin), dtype=jnp.float32)
        weight = jax.random.normal(k_w, (fin, fout), dtype=jnp.float32) * 0.1
        bias = jax.random.normal(k_b, (fout,), dtype=jnp.float32) * 0.1

        out = graph_conv(adj, feat, weight, bias, tm=128, tk=128)
        out = jax.block_until_ready(out)
        ref = graph_conv_ref(adj, feat, weight, bias)

        assert out.shape == (n, fout), f"bad shape for {name}"
        # bf16 streaming of adj/x with f32 accumulation -> bf16-level tolerance.
        assert jnp.allclose(out, ref, atol=3e-2, rtol=3e-2), f"mismatch vs reference ({name})"

    print("KERNEL_OK")
</pallas_src>

<mosaic_0001>
module attributes {stable_mosaic.version = 11 : i64} {
  func.func @_gcn_proj_first_kernel(%arg0: i32, %arg1: i32, %arg2: memref<128x128xbf16, #tpu.memory_space<vmem>>, %arg3: memref<384x128xbf16, #tpu.memory_space<vmem>>, %arg4: memref<128x1xf32, #tpu.memory_space<vmem>>, %arg5: memref<1x128xf32, #tpu.memory_space<vmem>>, %arg6: memref<128x128xf32, #tpu.memory_space<vmem>>, %arg7: memref<128x128xf32, #tpu.memory_space<vmem>>) attributes {dimension_semantics = [#tpu.dimension_semantics<parallel>, #tpu.dimension_semantics<arbitrary>], iteration_bounds = array<i64: 3, 3>, scalar_prefetch = 0 : i64, scratch_operands = 1 : i64, tpu.core_type = #tpu.core_type<tc>, window_params = [{transform_indices = @transform_0, window_bounds = array<i64: 128, 128>}, {pipeline_mode = #tpu.pipeline_mode<synchronous>, transform_indices = @transform_1, window_bounds = array<i64: 384, 128>}, {transform_indices = @transform_2, window_bounds = array<i64: 128, 1>}, {pipeline_mode = #tpu.pipeline_mode<synchronous>, transform_indices = @transform_3, window_bounds = array<i64: 1, 128>}, {transform_indices = @transform_4, window_bounds = array<i64: 128, 128>}]} {
    %c0_i32 = arith.constant 0 : i32
    %0 = arith.cmpi eq, %arg1, %c0_i32 : i32
    %1 = arith.extui %0 : i1 to i32
    %c0_i32_0 = arith.constant 0 : i32
    %2 = arith.cmpi ne, %1, %c0_i32_0 : i32
    scf.if %2 {
      %cst_8 = arith.constant 0.000000e+00 : f32
      %15 = vector.broadcast %cst_8 : f32 to vector<128x128xf32>
      %c0_9 = arith.constant 0 : index
      %c0_10 = arith.constant 0 : index
      %16 = vector.load %arg7[%c0_9, %c0_10] : memref<128x128xf32, #tpu.memory_space<vmem>>, vector<128x128xf32>
      tpu.vector_store %arg7[%c0_9, %c0_10], %15 {strides = array<i32>} : memref<128x128xf32, #tpu.memory_space<vmem>>, vector<128x128xf32>,
    } else {
    }
    %c128_i32 = arith.constant 128 : i32
    %3 = arith.muli %arg1, %c128_i32 : i32
    %4 = tpu.assume_multiple %3, 128 : i32
    %c0 = arith.constant 0 : index
    %c0_1 = arith.constant 0 : index
    %5 = vector.load %arg7[%c0, %c0_1] : memref<128x128xf32, #tpu.memory_space<vmem>>, vector<128x128xf32>
    %c0_2 = arith.constant 0 : index
    %c0_3 = arith.constant 0 : index
    %6 = vector.load %arg2[%c0_2, %c0_3] : memref<128x128xbf16, #tpu.memory_space<vmem>>, vector<128x128xbf16>
    %7 = arith.index_cast %4 : i32 to index
    %c0_4 = arith.constant 0 : index
    %8 = vector.load %arg3[%7, %c0_4] : memref<384x128xbf16, #tpu.memory_space<vmem>>, vector<128x128xbf16>
    %cst = arith.constant dense<0.000000e+00> : vector<128x128xf32>
    %9 = tpu.matmul %6, %8, %cst {dimension_numbers = #tpu.dot_dimension_numbers<[1], [0], [0], [1], [0, 0, 1, 1], [], []>} : vector<128x128xbf16>, vector<128x128xbf16>, vector<128x128xf32> -> vector<128x128xf32>
    %10 = arith.addf %5, %9 : vector<128x128xf32>
    %c0_5 = arith.constant 0 : index
    %c0_6 = arith.constant 0 : index
    %11 = vector.load %arg7[%c0_5, %c0_6] : memref<128x128xf32, #tpu.memory_space<vmem>>, vector<128x128xf32>
    tpu.vector_store %arg7[%c0_5, %c0_6], %10 {strides = array<i32>} : memref<128x128xf32, #tpu.memory_space<vmem>>, vector<128x128xf32>,
    %c2_i32 = arith.constant 2 : i32
    %12 = arith.cmpi eq, %arg1, %c2_i32 : i32
    %13 = arith.extui %12 : i1 to i32
    %c0_i32_7 = arith.constant 0 : i32
    %14 = arith.cmpi ne, %13, %c0_i32_7 : i32
    scf.if %14 {
      %c0_8 = arith.constant 0 : index
      %c0_9 = arith.constant 0 : index
      %15 = vector.load %arg7[%c0_8, %c0_9] : memref<128x128xf32, #tpu.memory_space<vmem>>, vector<128x128xf32>
      %c0_10 = arith.constant 0 : index
      %c0_11 = arith.constant 0 : index
      %16 = vector.load %arg4[%c0_10, %c0_11] : memref<128x1xf32, #tpu.memory_space<vmem>>, vector<128x1xf32>
      %17 = vector.broadcast %16 : vector<128x1xf32> to vector<128x128xf32>
      %18 = arith.mulf %15, %17 : vector<128x128xf32>
      %c0_12 = arith.constant 0 : index
      %c0_13 = arith.constant 0 : index
      %19 = vector.load %arg5[%c0_12, %c0_13] : memref<1x128xf32, #tpu.memory_space<vmem>>, vector<1x128xf32>
      %20 = vector.broadcast %19 : vector<1x128xf32> to vector<128x128xf32>
      %21 = arith.addf %18, %20 : vector<128x128xf32>
      %c0_14 = arith.constant 0 : index
      %c0_15 = arith.constant 0 : index
      %22 = vector.load %arg6[%c0_14, %c0_15] : memref<128x128xf32, #tpu.memory_space<vmem>>, vector<128x128xf32>
      tpu.vector_store %arg6[%c0_14, %c0_15], %21 {strides = array<i32>} : memref<128x128xf32, #tpu.memory_space<vmem>>, vector<128x128xf32>,
    } else {
    }
    return
  }
  func.func @transform_0(%arg0: i32, %arg1: i32) -> (i32, i32) {
    %c0_i32 = arith.constant 0 : i32
    return %arg0, %arg1 : i32, i32
  }
  func.func @transform_1(%arg0: i32, %arg1: i32) -> (i32, i32) {
    %c0_i32 = arith.constant 0 : i32
    %c0_i32_0 = arith.constant 0 : i32
    %c0_i32_1 = arith.constant 0 : i32
    return %c0_i32, %c0_i32_0 : i32, i32
  }
  func.func @transform_2(%arg0: i32, %arg1: i32) -> (i32, i32) {
    %c0_i32 = arith.constant 0 : i32
    %c0_i32_0 = arith.constant 0 : i32
    return %arg0, %c0_i32 : i32, i32
  }
  func.func @transform_3(%arg0: i32, %arg1: i32) -> (i32, i32) {
    %c0_i32 = arith.constant 0 : i32
    %c0_i32_0 = arith.constant 0 : i32
    %c0_i32_1 = arith.constant 0 : i32
    return %c0_i32, %c0_i32_0 : i32, i32
  }
  func.func @transform_4(%arg0: i32, %arg1: i32) -> (i32, i32) {
    %c0_i32 = arith.constant 0 : i32
    %c0_i32_0 = arith.constant 0 : i32
    return %arg0, %c0_i32 : i32, i32
  }
}

</mosaic_0001>

<bundles_post_ra>
// kernel: tpu_custom_call.1
= control target key start
LH: loop header
LB: loop body
LE: loop exit
PB: predicated region body
PF: predicated region fallthrough
CT: control target
= control target key end

     0   :  { %9 = vsyncpa [#allocation4], 0  ;;  %s1477_s0 = inlined_call_operand.hbm [shape: bf16[384,384], index: 0, kind: input, shape index: {}]   ;;  %s1478_s1 = inlined_call_operand.vmem [shape: bf16[384,128], index: 1, kind: input, shape index: {}]   ;;  %s1479_s2 = inlined_call_operand.vmem [shape: f32[384,1], index: 2, kind: input, shape index: {}]   ;;  %s1480_s3 = inlined_call_operand.vmem [shape: f32[1,128], index: 3, kind: input, shape index: {}]   ;;  %s1481_s4 = inlined_call_operand.hbm [shape: f32[384,128], index: 4, kind: output, shape index: {}]  }
   0x1   :  { %11 = vsyncpa [#allocation4 + $0x1], 0 }
   0x2   :  { %12 = vsyncpa [#allocation5], 0 }
   0x3   :  { %14 = vsyncpa [#allocation5 + $0x1], 0  ;;  %s1219_s15 = smov 0   ;;  %s1221_s16 = smov 0  }
   0x4   :  { %s1223_s17 = smov 0   ;;  %s1225_s18 = smov 0  }
   0x5   :  { %s1227_s19 = smov 0   ;;  %s1229_s20 = smov 0  }
   0x6   :  { %s1231_s21 = smov 0   ;;  %s1233_s22 = smov 0  }
   0x7   :  { %s1235_s23 = smov 0   ;;  %s1237_s24 = smov 0  }
   0x8   :  { %s1239_s25 = smov 0  }
   0x9 LB: > { %1487 = sst [smem:[#allocation9_spill]] %s1153_s17  ;;  %s792_s26 = sadd.s32 4294967295, %s1185_s25   ;;  %s1185_s25 = sphi %s1239_s25, %s20_s25   ;;  %s1181_s24 = sphi %s1237_s24, %s1512_s24   ;;  %s1177_s23 = sphi %s1235_s23, %s1511_s23   ;;  %s1173_s22 = sphi %s1233_s22, %s1510_s22   ;;  %s1169_s21 = sphi %s1231_s21, %s1509_s21   ;;  %s1165_s20 = sphi %s1229_s20, %s1502_s20   ;;  %s1161_s19 = sphi %s1227_s19, %s1508_s19   ;;  %s1157_s18 = sphi %s1225_s18, %s1507_s18   ;;  %s1153_s17 = sphi %s1223_s17, %s1500_s17   ;;  %s1149_s16 = sphi %s1221_s16, %s1506_s16   ;;  %s1145_s15 = sphi %s1219_s15, %s1505_s15  }
   0xa   : > { %1488 = sst [smem:[#allocation10_spill]] %s1165_s20  ;;  %s793_s27 = sadd.s32 4294967294, %s1185_s25  }
   0xb   : > { %s29_s28 = sadd.s32 1, %s1177_s23  ;;  %s32_s29 = sadd.s32 1, %s1181_s24 }
   0xc   : > { %p30_p0 = scmp.ge.s32.totalorder %s29_s28, 3  ;;  %s41_s30 = sadd.s32 1, %s1165_s20 }
   0xd   : > { %p48_p1 = scmp.ne.s32.totalorder %s1165_s20, %s1161_s19  ;;  %p49_p2 = scmp.eq.s32.totalorder %s1185_s25, 0 }
   0xe   : > { %s1514_s28 = smov (%p30_p0, %s29_s28), 0  ;;  %s1516_s29 = smov (!%p30_p0, %s32_s29), %s1181_s24 }
   0xf   : > { %1489 = sst [smem:[#allocation11_spill]] %s1514_s28  ;;  %s37_s5 = ssub.s32 %s1177_s23, %s1514_s28 }
  0x10   : > { %p1285_p3 = por %p49_p2, %p48_p1  ;;  %p34_p4 = scmp.ge.s32.totalorder %s1516_s29, 3 }
  0x11   : > { %p54_p5 = scmp.ne.s32.totalorder %s1161_s19, %s1157_s18  ;;  %p55_p6 = scmp.eq.s32.totalorder %s792_s26, 0 }
  0x12   : > { %s135_s7 = sadd.s32 1, %s1153_s17  ;;  %s1518_s29 = smov (%p34_p4, %s1516_s29), 0 }
  0x13   : > { %1491 = sst [smem:[#allocation12_spill]] %s1518_s29  ;;  %p1293_p7 = por %p55_p6, %p54_p5 }
  0x14   : > { %p145_p8 = scmp.ne.s32.totalorder %s1153_s17, %s1149_s16  ;;  %s36_s9 = ssub.s32 %s1181_s24, %s1518_s29 }
  0x15   : > { %p146_p9 = scmp.eq.s32.totalorder %s792_s26, 8  ;;  %s38_s10 = sor.u32 %s37_s5, %s36_s9 }
  0x16   : > { %p133_p10 = scmp.eq.s32.totalorder %s36_s9, 0  ;;  %p39_p11 = scmp.eq.s32.totalorder %s38_s10, 0 }
  0x17   : > { %p1301_p12 = por %p146_p9, %p145_p8  ;;  %p151_p13 = scmp.ne.s32.totalorder %s1149_s16, %s1145_s15 }
  0x18   : > { %s1306_s12 = scalar_select %p133_p10, %s1153_s17, %s135_s7  }
  0x19   : > { %s1309_s13 = scalar_select %p39_p11, %s1165_s20, %s41_s30  }
  0x1a   : > { %1494 = sst [smem:[#allocation13_spill]] %s1306_s12  ;;  %p152_p0 = scmp.eq.s32.totalorder %s793_s27, 8 }
  0x1b   : > { %1495 = sst [smem:[#allocation14_spill]] %s1309_s13  ;;  %p932_p1 = scmp.lt.s32.totalorder %s1185_s25, 9 }
  0x1c   : > { %p1314_p2 = por %p152_p0, %p151_p13  ;;  %s178_s18 = sand.u32 1, %s1165_s20  }
  0x1d   : > { %s796_s26 = sshll.u32 %s178_s18, 6  ;;  %s919_s5 = smul.u32 48, %s1181_s24 }
  0x1e   : > { %s1496_s14 = scalar_select %p1314_p2, 1, 0 }
  0x1f   : > { %s182_s9 = scalar_lea.vmem [#allocation3], %s796_s26  ;;  %p925_p4 = pnand %p932_p1, %p1285_p3 }
  0x20   : > { %1497 = sst [smem:[#allocation15_spill]] %s1496_s14  ;;  %s192_s10 = sshll.u32 %s182_s9, 4  ;;  %s193_s10 = int_to_ptr.vmem [resolvable:$true] %s192_s10 }
  0x21   : > { %s187_s7 = sadd.s32 %s1177_s23, %s919_s5  ;;  %s179_s12 = scalar_lea.sflag [#allocation4], %s178_s18 }
  0x22   : > { %s799_s30 = sshll.u32 %s187_s7, 2  ;;  %s1187_s17 = smov 192  }
  0x23   : > { %s189_s27 = scalar_lea.hbm %s1477_s0, %s799_s30  ;;  %s1188_s20 = smov 64  }
  0x24   : > { %s190_s13 = sshll.u32 %s189_s27, 4  ;;  %s1189_s14 = smov 4   ;;  %s191_s13 = int_to_ptr.hbm [resolvable:$true] %s190_s13 }
  0x25   : > { %927 = dma.hbm_to_vmem [thread:$0]  (!%p925_p4), %s191_s13, 1024, %s193_s10, %s179_s12, %s1187_s17, %s1188_s20, %s1189_s14  }
  0x26   : > { %p800_p5 = scmp.ge.s32.totalorder %s1185_s25, 1  ;;  %p209_p6 = scmp.lt.s32.totalorder %s1185_s25, 10 }
  0x28   : > { %p210_p8 = pnand %p800_p5, %p209_p6 }
  0x29   : > { %s215_s6 = sand.u32 (!%p210_p8), 1, %s1161_s19  }
  0x2a   : > { %213 = sbr.rel (%p210_p8) target bundleno = 450 (0x1c2), region = 36  ;;  %s801_s26 = sshll.u32 (!%p210_p8), %s215_s6, 6 }
  0x2b   : > { %s216_s5 = scalar_lea.sflag (!%p210_p8), [#allocation4], %s215_s6  ;;  %s1329_s9 = scalar_lea.vmem (!%p210_p8), [#allocation3], %s801_s26 }
  0x2f   : > { %1136 = dma.done.wait (%p1293_p7), %s216_s5, 1024  }
  0x30   : > { %1138 = vsyncadd (%p1293_p7), %s216_s5, 4294966272  ;;  %s247_s17 = sand.u32 1, %s1149_s16   ;;  %s803_s20 = sshll.u32 %s1173_s22, 4 }
  0x31   : > { %s802_s28 = sshll.u32 %s247_s17, 7  ;;  %p252_p3 = scmp.lt.s32.totalorder %s803_s20, 47 }
  0x32   : > { %s1344_s18 = scalar_lea.vmem [#allocation6], %s802_s28  ;;  %p805_p9 = scmp.ne.s32.totalorder %s1169_s21, 0 }
  0x33   : > { %s1520_s20 = smov (!%p252_p3, %s803_s20), 47 }
  0x34   : > { %s804_s29 = sshll.u32 %s1520_s20, 3  ;;  %261 = sbr.rel (%p805_p9) target bundleno = 74 (0x4a), region = 44 }
  0x35   : > { %s1342_s14 = scalar_lea.vmem %s1479_s2, %s804_s29 }
  0x39   : > { %v1190_v0 = vmov 0.0  }
  0x3a   : > { %262 = vst [vmem:[#allocation2 + $0x30] sm:$0xff] %v1190_v0 }
  0x3b   : > { %263 = vst [vmem:[#allocation2] sm:$0xff] %v1190_v0 }
  0x3c   : > { %264 = vst [vmem:[#allocation2 + $0x58] sm:$0xff] %v1190_v0 }
  0x3d   : > { %265 = vst [vmem:[#allocation2 + $0x18] sm:$0xff] %v1190_v0 }
  0x3e   : > { %266 = vst [vmem:[#allocation2 + $0x50] sm:$0xff] %v1190_v0 }
  0x3f   : > { %267 = vst [vmem:[#allocation2 + $0x68] sm:$0xff] %v1190_v0 }
  0x40   : > { %268 = vst [vmem:[#allocation2 + $0x8] sm:$0xff] %v1190_v0 }
  0x41   : > { %269 = vst [vmem:[#allocation2 + $0x48] sm:$0xff] %v1190_v0 }
  0x42   : > { %270 = vst [vmem:[#allocation2 + $0x40] sm:$0xff] %v1190_v0 }
  0x43   : > { %271 = vst [vmem:[#allocation2 + $0x20] sm:$0xff] %v1190_v0 }
  0x44   : > { %272 = vst [vmem:[#allocation2 + $0x10] sm:$0xff] %v1190_v0 }
  0x45   : > { %273 = vst [vmem:[#allocation2 + $0x38] sm:$0xff] %v1190_v0 }
  0x46   : > { %274 = vst [vmem:[#allocation2 + $0x60] sm:$0xff] %v1190_v0 }
  0x47   : > { %275 = vst [vmem:[#allocation2 + $0x70] sm:$0xff] %v1190_v0 }
  0x48   : > { %276 = vst [vmem:[#allocation2 + $0x78] sm:$0xff] %v1190_v0 }
  0x49   : > { %277 = vst [vmem:[#allocation2 + $0x28] sm:$0xff] %v1190_v0 }
  0x4a PF: > { %s806_s8 = sshll.u32 %s1169_s21, 7  ;;  %v878_v9 = vld [vmem:[%s1329_s9] sm:$0xff]  ;;  %v880_v10 = vld [vmem:[%s1329_s9 + $0x10] sm:$0xff]  ;;  %v879_v13 = vld [vmem:[%s1329_s9 + $0x8] sm:$0xff]  ;;  %p872_p7 = scmp.ne.s32.totalorder %s1169_s21, 2 }
  0x4b   : > { %s311_s10 = sshra.s32 %s806_s8, 3  ;;  %v882_v11 = vld [vmem:[%s1329_s9 + $0x20] sm:$0xff]  ;;  %v884_v12 = vld [vmem:[%s1329_s9 + $0x30] sm:$0xff]  ;;  %v881_v14 = vld [vmem:[%s1329_s9 + $0x18] sm:$0xff] }
  0x4c   : > { %s807_s7 = sshll.u32 %s311_s10, 2  ;;  %v883_v15 = vld [vmem:[%s1329_s9 + $0x28] sm:$0xff]  ;;  %v885_v16 = vld [vmem:[%s1329_s9 + $0x38] sm:$0xff]  ;;  %v279_v17 = vld [vmem:[#allocation2 + $0x30] sm:$0xff] }
  0x4d   : > { %s1351_s6 = scalar_lea.vmem %s1478_s1, %s807_s7  ;;  %v283_v18 = vld [vmem:[#allocation2 + $0x50] sm:$0xff]  ;;  %v287_v23 = vld [vmem:[#allocation2 + $0x40] sm:$0xff]  ;;  %v284_v26 = vld [vmem:[#allocation2 + $0x68] sm:$0xff] }
  0x4e   : > { %v893_v1 = vld [vmem:[%s1351_s6 + $0x38] sm:$0xff]  ;;  %v892_v2 = vld [vmem:[%s1351_s6 + $0x30] sm:$0xff]  ;;  %v891_v3 = vld [vmem:[%s1351_s6 + $0x28] sm:$0xff] }
  0x4f   : > { %427 = vmatpush.bf16.msra.mxu0 %v893_v1  ;;  %895 = vmatpush.bf16.msra.mxu1 %v893_v1  ;;  %v890_v4 = vld [vmem:[%s1351_s6 + $0x20] sm:$0xff]  ;;  %v889_v5 = vld [vmem:[%s1351_s6 + $0x18] sm:$0xff]  ;;  %v888_v6 = vld [vmem:[%s1351_s6 + $0x10] sm:$0xff] }
  0x50   : > { %896 = vmatpush.bf16.msra.mxu2 %v893_v1  ;;  %897 = vmatpush.bf16.msra.mxu3 %v893_v1  ;;  %v887_v7 = vld [vmem:[%s1351_s6 + $0x8] sm:$0xff]  ;;  %v886_v8 = vld [vmem:[%s1351_s6] sm:$0xff]  ;;  %v292_v36 = vld [vmem:[#allocation2 + $0x70] sm:$0xff] }
  0x51   : > { %v291_v24 = vld [vmem:[#allocation2 + $0x60] sm:$0xff]  ;;  %v281_v37 = vld [vmem:[#allocation2 + $0x58] sm:$0xff]  ;;  %v285_v38 = vld [vmem:[#allocation2 + $0x8] sm:$0xff] }
  0x52   : > { %v280_v25 = vld [vmem:[#allocation2] sm:$0xff]  ;;  %v289_v47 = vld [vmem:[#allocation2 + $0x10] sm:$0xff]  ;;  %v293_v48 = vld [vmem:[#allocation2 + $0x78] sm:$0xff] }
  0x53   : > { %428 = vmatpush.bf16.msra.mxu0 %v892_v2  ;;  %898 = vmatpush.bf16.msra.mxu1 %v892_v2  ;;  %v288_v35 = vld [vmem:[#allocation2 + $0x20] sm:$0xff]  ;;  %v282_v49 = vld [vmem:[#allocation2 + $0x18] sm:$0xff]  ;;  %v286_v50 = vld [vmem:[#allocation2 + $0x48] sm:$0xff] }
  0x54   : > { %899 = vmatpush.bf16.msra.mxu2 %v892_v2  ;;  %900 = vmatpush.bf16.msra.mxu3 %v892_v2  ;;  %v290_v59 = vld [vmem:[#allocation2 + $0x38] sm:$0xff]  ;;  %v294_v60 = vld [vmem:[#allocation2 + $0x28] sm:$0xff] }
  0x57   : > { %429 = vmatpush.bf16.msra.mxu0 %v891_v3  ;;  %901 = vmatpush.bf16.msra.mxu1 %v891_v3 }
  0x58   : > { %902 = vmatpush.bf16.msra.mxu2 %v891_v3  ;;  %903 = vmatpush.bf16.msra.mxu3 %v891_v3 }
  0x5b   : > { %430 = vmatpush.bf16.msra.mxu0 %v890_v4  ;;  %904 = vmatpush.bf16.msra.mxu1 %v890_v4 }
  0x5c   : > { %905 = vmatpush.bf16.msra.mxu2 %v890_v4  ;;  %906 = vmatpush.bf16.msra.mxu3 %v890_v4 }
  0x5f   : > { %431 = vmatpush.bf16.msra.mxu0 %v889_v5  ;;  %907 = vmatpush.bf16.msra.mxu1 %v889_v5 }
  0x60   : > { %908 = vmatpush.bf16.msra.mxu2 %v889_v5  ;;  %909 = vmatpush.bf16.msra.mxu3 %v889_v5 }
  0x63   : > { %432 = vmatpush.bf16.msra.mxu0 %v888_v6  ;;  %910 = vmatpush.bf16.msra.mxu1 %v888_v6 }
  0x64   : > { %911 = vmatpush.bf16.msra.mxu2 %v888_v6  ;;  %912 = vmatpush.bf16.msra.mxu3 %v888_v6 }
  0x67   : > { %433 = vmatpush.bf16.msra.mxu0 %v887_v7  ;;  %913 = vmatpush.bf16.msra.mxu1 %v887_v7 }
  0x68   : > { %914 = vmatpush.bf16.msra.mxu2 %v887_v7  ;;  %915 = vmatpush.bf16.msra.mxu3 %v887_v7 }
  0x6b   : > { %434 = vmatpush.bf16.msra.mxu0 %v886_v8  ;;  %916 = vmatpush.bf16.msra.mxu1 %v886_v8 }
  0x6c   : > { %917 = vmatpush.bf16.msra.mxu2 %v886_v8  ;;  %918 = vmatpush.bf16.msra.mxu3 %v886_v8 }
  0x6e   : > { %435 = vmatmul.bf16.vlgmr.msra.gmra.mxu0 %v878_v9  ;;  %445 = vmatmul.bf16.vlgmr.msra.gmra.mxu1 %v880_v10 }
  0x6f   : > { %455 = vmatmul.bf16.vlgmr.msra.gmra.mxu2 %v882_v11  ;;  %465 = vmatmul.bf16.vlgmr.msra.gmra.mxu3 %v884_v12 }
  0x7e   : > { %440 = vmatmul.bf16.gmra.mxu0 %v879_v13  ;;  %450 = vmatmul.bf16.gmra.mxu1 %v881_v14 }
  0x7f   : > { %460 = vmatmul.bf16.gmra.mxu2 %v883_v15  ;;  %470 = vmatmul.bf16.gmra.mxu3 %v885_v16 }
  0xeb   : > { %v436_v19 = vpop.f32.mrf.mxu0  ;;  %v446_v20 = vpop.f32.mrf.mxu1 }
  0xec   : > { %v476_v21 = vadd.f32 %v436_v19, %v279_v17  ;;  %v480_v22 = vadd.f32 %v446_v20, %v283_v18 }
  0xee   : > { %492 = vst [vmem:[#allocation2 + $0x30] sm:$0xff] %v476_v21 }
  0xef   : > { %496 = vst [vmem:[#allocation2 + $0x50] sm:$0xff] %v480_v22 }
  0xf2   : > { %v456_v27 = vpop.f32.mrf.mxu2  ;;  %v466_v28 = vpop.f32.mrf.mxu3 }
  0xf3   : > { %v484_v29 = vadd.f32 %v456_v27, %v287_v23  ;;  %v488_v30 = vadd.f32 %v466_v28, %v291_v24  ;;  %v438_v31 = vpop.f32.mrf.mxu0  ;;  %v448_v32 = vpop.f32.mrf.mxu1 }
  0xf4   : > { %v477_v33 = vadd.f32 %v438_v31, %v280_v25  ;;  %v481_v34 = vadd.f32 %v448_v32, %v284_v26 }
  0xf5   : > { %500 = vst [vmem:[#allocation2 + $0x40] sm:$0xff] %v484_v29 }
  0xf6   : > { %504 = vst [vmem:[#allocation2 + $0x60] sm:$0xff] %v488_v30 }
  0xf7   : > { %493 = vst [vmem:[#allocation2] sm:$0xff] %v477_v33 }
  0xf8   : > { %497 = vst [vmem:[#allocation2 + $0x68] sm:$0xff] %v481_v34 }
  0xfa   : > { %v458_v39 = vpop.f32.mrf.mxu2  ;;  %v468_v40 = vpop.f32.mrf.mxu3 }
  0xfb   : > { %v485_v41 = vadd.f32 %v458_v39, %v288_v35  ;;  %v489_v42 = vadd.f32 %v468_v40, %v292_v36  ;;  %v441_v43 = vpop.f32.mrf.mxu0  ;;  %v451_v44 = vpop.f32.mrf.mxu1 }
  0xfc   : > { %v478_v45 = vadd.f32 %v441_v43, %v281_v37  ;;  %v482_v46 = vadd.f32 %v451_v44, %v285_v38 }
  0xfd   : > { %501 = vst [vmem:[#allocation2 + $0x20] sm:$0xff] %v485_v41 }
  0xfe   : > { %505 = vst [vmem:[#allocation2 + $0x70] sm:$0xff] %v489_v42 }
  0xff   : > { %494 = vst [vmem:[#allocation2 + $0x58] sm:$0xff] %v478_v45 }
 0x100   : > { %498 = vst [vmem:[#allocation2 + $0x8] sm:$0xff] %v482_v46 }
 0x102   : > { %v461_v51 = vpop.f32.mrf.mxu2  ;;  %v471_v52 = vpop.f32.mrf.mxu3 }
 0x103   : > { %v486_v53 = vadd.f32 %v461_v51, %v289_v47  ;;  %v490_v54 = vadd.f32 %v471_v52, %v293_v48  ;;  %v443_v55 = vpop.f32.mrf.mxu0  ;;  %v453_v56 = vpop.f32.mrf.mxu1 }
 0x104   : > { %v479_v57 = vadd.f32 %v443_v55, %v282_v49  ;;  %v483_v58 = vadd.f32 %v453_v56, %v286_v50 }
 0x105   : > { %502 = vst [vmem:[#allocation2 + $0x10] sm:$0xff] %v486_v53 }
 0x106   : > { %506 = vst [vmem:[#allocation2 + $0x78] sm:$0xff] %v490_v54 }
 0x107   : > { %495 = vst [vmem:[#allocation2 + $0x18] sm:$0xff] %v479_v57 }
 0x108   : > { %499 = vst [vmem:[#allocation2 + $0x48] sm:$0xff] %v483_v58 }
 0x10a   : > { %v463_v61 = vpop.f32.mrf.mxu2  ;;  %v473_v62 = vpop.f32.mrf.mxu3  ;;  %511 = sbr.rel (%p872_p7) target bundleno = 434 (0x1b2), region = 48 }
 0x10b   : > { %v487_v63 = vadd.f32 %v463_v61, %v290_v59  ;;  %v491_v0 = vadd.f32 %v473_v62, %v294_v60 }
 0x10d   : > { %503 = vst [vmem:[#allocation2 + $0x38] sm:$0xff] %v487_v63 }
 0x10e   : > { %507 = vst [vmem:[#allocation2 + $0x28] sm:$0xff] %v491_v0 }
 0x10f   : > { %v532_v1 = vld [vmem:[%s1342_s14 + $0x20] sm:$0xff]  ;;  %v530_v2 = vld [vmem:[%s1342_s14 + $0x10] sm:$0xff]  ;;  %v1191_v4 = vmov 0   ;;  %v533_v5 = vld [vmem:[%s1342_s14 + $0x28] sm:$0xff] }
 0x110   : > { %v528_v3 = vld [vmem:[%s1342_s14] sm:$0xff]  ;;  %1031 = vset.pattern.permute.xlu2 %v1191_v4  ;;  %1030 = vset.pattern.permute.xlu1 %v1191_v4  ;;  %v531_v6 = vld [vmem:[%s1342_s14 + $0x18] sm:$0xff]  ;;  %v529_v7 = vld [vmem:[%s1342_s14 + $0x8] sm:$0xff] }
 0x111   : > { %1029 = vset.pattern.permute.xlu0 %v1191_v4  ;;  %566 = vperm.xlu2 %1031, %v532_v1   ;;  %v536_v8 = vld [vmem:[%s1342_s14 + $0x40] sm:$0xff]  ;;  %v535_v9 = vld [vmem:[%s1342_s14 + $0x38] sm:$0xff]  ;;  %v534_v10 = vld [vmem:[%s1342_s14 + $0x30] sm:$0xff] }
 0x112   : > { %556 = vperm.xlu1 %1030, %v530_v2   ;;  %546 = vperm.xlu0 %1029, %v528_v3   ;;  %v539_v11 = vld [vmem:[%s1342_s14 + $0x58] sm:$0xff]  ;;  %v538_v12 = vld [vmem:[%s1342_s14 + $0x50] sm:$0xff]  ;;  %v537_v13 = vld [vmem:[%s1342_s14 + $0x48] sm:$0xff] }
 0x113   : > { %v542_v14 = vld [vmem:[%s1342_s14 + $0x70] sm:$0xff]  ;;  %v541_v15 = vld [vmem:[%s1342_s14 + $0x68] sm:$0xff]  ;;  %v540_v16 = vld [vmem:[%s1342_s14 + $0x60] sm:$0xff] }
 0x114   : > { %v543_v17 = vld [vmem:[%s1342_s14 + $0x78] sm:$0xff]  ;;  %v516_v18 = vld [vmem:[#allocation2 + $0x50] sm:$0xff]  ;;  %v1389_v20 = vld [vmem:[%s1480_s3] ss:$0 sm:$0xff] }
 0x115   : > { %v517_v23 = vld [vmem:[#allocation2 + $0x68] sm:$0xff]  ;;  %v520_v27 = vld [vmem:[#allocation2 + $0x40] sm:$0xff]  ;;  %v523_v31 = vld [vmem:[#allocation2 + $0x38] sm:$0xff] }
 0x116   : > { %v514_v32 = vld [vmem:[#allocation2 + $0x58] sm:$0xff]  ;;  %v512_v33 = vld [vmem:[#allocation2 + $0x30] sm:$0xff]  ;;  %v513_v45 = vld [vmem:[#allocation2] sm:$0xff] }
 0x117   : > { %v526_v43 = vld [vmem:[#allocation2 + $0x78] sm:$0xff]  ;;  %v519_v55 = vld [vmem:[#allocation2 + $0x48] sm:$0xff]  ;;  %v522_v63 = vld [vmem:[#allocation2 + $0x10] sm:$0xff] }
 0x118   : > { %v515_v44 = vld [vmem:[#allocation2 + $0x18] sm:$0xff]  ;;  %v518_v56 = vld [vmem:[#allocation2 + $0x8] sm:$0xff]  ;;  %v521_v0 = vld [vmem:[#allocation2 + $0x20] sm:$0xff] }
 0x119   : > { %571 = vperm.xlu2 %1031, %v533_v5  }
 0x11a   : > { %561 = vperm.xlu1 %1030, %v531_v6   ;;  %551 = vperm.xlu0 %1029, %v529_v7   ;;  %v525_v7 = vld [vmem:[#allocation2 + $0x70] sm:$0xff] }
 0x121   : > { %586 = vperm.xlu2 %1031, %v536_v8   ;;  %v524_v8 = vld [vmem:[#allocation2 + $0x60] sm:$0xff] }
 0x122   : > { %581 = vperm.xlu1 %1030, %v535_v9   ;;  %576 = vperm.xlu0 %1029, %v534_v10  }
 0x129   : > { %601 = vperm.xlu2 %1031, %v539_v11  }
 0x12a   : > { %596 = vperm.xlu1 %1030, %v538_v12   ;;  %591 = vperm.xlu0 %1029, %v537_v13  }
 0x131   : > { %616 = vperm.xlu2 %1031, %v542_v14  }
 0x132   : > { %611 = vperm.xlu1 %1030, %v541_v15   ;;  %606 = vperm.xlu0 %1029, %v540_v16   ;;  %v527_v15 = vld [vmem:[#allocation2 + $0x28] sm:$0xff] }
 0x13a   : > { %621 = vperm.xlu0 %1029, %v543_v17  }
 0x16b   : > { %v567_v19 = vpop.permute.xlu2 %566 }
 0x16c   : > { %v628_v21 = vmul.f32 %v567_v19, %v516_v18 }
 0x16e   : > { %v648_v22 = vadd.f32 %v1389_v20, %v628_v21 }
 0x170   : > { %664 = vst [vmem:[%s1344_s18 + $0x20] sm:$0xff] %v648_v22 }
 0x173   : > { %v572_v24 = vpop.permute.xlu2 %571 }
 0x174   : > { %v629_v25 = vmul.f32 %v572_v24, %v517_v23 }
 0x176   : > { %v649_v26 = vadd.f32 %v1389_v20, %v629_v25 }
 0x178   : > { %665 = vst [vmem:[%s1344_s18 + $0x28] sm:$0xff] %v649_v26 }
 0x17b   : > { %v587_v28 = vpop.permute.xlu2 %586 }
 0x17c   : > { %v632_v29 = vmul.f32 %v587_v28, %v520_v27 }
 0x17e   : > { %v652_v30 = vadd.f32 %v1389_v20, %v632_v29 }
 0x180   : > { %668 = vst [vmem:[%s1344_s18 + $0x40] sm:$0xff] %v652_v30 }
 0x183   : > { %v602_v34 = vpop.permute.xlu2 %601 }
 0x184   : > { %v635_v35 = vmul.f32 %v602_v34, %v523_v31  ;;  %v557_v36 = vpop.permute.xlu1 %556  ;;  %v547_v37 = vpop.permute.xlu0 %546 }
 0x185   : > { %v626_v38 = vmul.f32 %v557_v36, %v514_v32  ;;  %v624_v39 = vmul.f32 %v547_v37, %v512_v33 }
 0x186   : > { %v655_v40 = vadd.f32 %v1389_v20, %v635_v35 }
 0x187   : > { %v646_v41 = vadd.f32 %v1389_v20, %v626_v38  ;;  %v644_v42 = vadd.f32 %v1389_v20, %v624_v39 }
 0x188   : > { %671 = vst [vmem:[%s1344_s18 + $0x58] sm:$0xff] %v655_v40 }
 0x189   : > { %662 = vst [vmem:[%s1344_s18 + $0x10] sm:$0xff] %v646_v41 }
 0x18a   : > { %660 = vst [vmem:[%s1344_s18] sm:$0xff] %v644_v42 }
 0x18b   : > { %v617_v46 = vpop.permute.xlu2 %616 }
 0x18c   : > { %v638_v47 = vmul.f32 %v617_v46, %v526_v43  ;;  %v562_v48 = vpop.permute.xlu1 %561  ;;  %v552_v49 = vpop.permute.xlu0 %551 }
 0x18d   : > { %v627_v50 = vmul.f32 %v562_v48, %v515_v44  ;;  %v625_v51 = vmul.f32 %v552_v49, %v513_v45 }
 0x18e   : > { %v658_v52 = vadd.f32 %v1389_v20, %v638_v47 }
 0x18f   : > { %v647_v53 = vadd.f32 %v1389_v20, %v627_v50  ;;  %v645_v54 = vadd.f32 %v1389_v20, %v625_v51 }
 0x190   : > { %674 = vst [vmem:[%s1344_s18 + $0x70] sm:$0xff] %v658_v52 }
 0x191   : > { %663 = vst [vmem:[%s1344_s18 + $0x18] sm:$0xff] %v647_v53 }
 0x192   : > { %661 = vst [vmem:[%s1344_s18 + $0x8] sm:$0xff] %v645_v54 }
 0x194   : > { %v582_v57 = vpop.permute.xlu1 %581  ;;  %v577_v58 = vpop.permute.xlu0 %576 }
 0x195   : > { %v631_v59 = vmul.f32 %v582_v57, %v519_v55  ;;  %v630_v60 = vmul.f32 %v577_v58, %v518_v56 }
 0x197   : > { %v651_v61 = vadd.f32 %v1389_v20, %v631_v59  ;;  %v650_v62 = vadd.f32 %v1389_v20, %v630_v60 }
 0x199   : > { %667 = vst [vmem:[%s1344_s18 + $0x38] sm:$0xff] %v651_v61 }
 0x19a   : > { %666 = vst [vmem:[%s1344_s18 + $0x30] sm:$0xff] %v650_v62 }
 0x19c   : > { %v597_v1 = vpop.permute.xlu1 %596  ;;  %v592_v2 = vpop.permute.xlu0 %591 }
 0x19d   : > { %v634_v3 = vmul.f32 %v597_v1, %v522_v63  ;;  %v633_v4 = vmul.f32 %v592_v2, %v521_v0 }
 0x19f   : > { %v654_v5 = vadd.f32 %v1389_v20, %v634_v3  ;;  %v653_v6 = vadd.f32 %v1389_v20, %v633_v4 }
 0x1a1   : > { %670 = vst [vmem:[%s1344_s18 + $0x50] sm:$0xff] %v654_v5 }
 0x1a2   : > { %669 = vst [vmem:[%s1344_s18 + $0x48] sm:$0xff] %v653_v6 }
 0x1a4   : > { %v612_v9 = vpop.permute.xlu1 %611  ;;  %v607_v10 = vpop.permute.xlu0 %606 }
 0x1a5   : > { %v637_v11 = vmul.f32 %v612_v9, %v525_v7  ;;  %v636_v12 = vmul.f32 %v607_v10, %v524_v8 }
 0x1a7   : > { %v657_v13 = vadd.f32 %v1389_v20, %v637_v11  ;;  %v656_v14 = vadd.f32 %v1389_v20, %v636_v12 }
 0x1a9   : > { %673 = vst [vmem:[%s1344_s18 + $0x68] sm:$0xff] %v657_v13 }
 0x1aa   : > { %672 = vst [vmem:[%s1344_s18 + $0x60] sm:$0xff] %v656_v14 }
 0x1ac   : > { %v622_v16 = vpop.permute.xlu0 %621 }
 0x1ad   : > { %v639_v17 = vmul.f32 %v622_v16, %v527_v15 }
 0x1af   : > { %v659_v18 = vadd.f32 %v1389_v20, %v639_v17 }
 0x1b1   : > { %675 = vst [vmem:[%s1344_s18 + $0x78] sm:$0xff] %v659_v18 }
 0x1b2 PF: > { %s894_s5 = sshll.u32 %s1173_s22, 7  ;;  %s689_s29 = sshll.u32 %s1344_s18, 4  ;;  %s690_s29 = int_to_ptr.vmem [resolvable:$true] %s689_s29 }
 0x1b3   : > { %s688_s28 = scalar_lea.hbm %s1481_s4, %s894_s5  ;;  %s677_s13 = scalar_lea.sflag [#allocation5], %s247_s17 }
 0x1b4   : > { %s691_s12 = sshll.u32 %s688_s28, 4  ;;  %s1083_s22 = scalar_lea.hbm %s1481_s4, 384  ;;  %s692_s12 = int_to_ptr.hbm [resolvable:$true] %s691_s12 }
 0x1b5   : > { %s1077_s14 = sshra.s32 %s692_s12, 4  ;;  %s1078_s14 = int_to_ptr.hbm [resolvable:$true] %s1077_s14 }
 0x1b6   : > { %s1079_s8 = scalar_lea.hbm %s1078_s14, 128  ;;  %p1084_p0 = scmp.lt.s32.totalorder %s1078_s14, %s1481_s4 }
 0x1b7   : > { %p1080_p10 = scmp.ne.s32.totalorder %s1078_s14, %s1079_s8  ;;  %p1085_p1 = scmp.lt.s32.totalorder %s1083_s22, %s1079_s8 }
 0x1b9   : > { %p1081_p11 = pnand %p1080_p10, %p1301_p12  ;;  %p1086_p4 = por %p1085_p1, %p1084_p0 }
 0x1bb   : > { %p1082_p13 = pneg %p1081_p11 }
 0x1bd   : > { %p1087_p5 = pnand %p1086_p4, %p1082_p13 }
 0x1bf   : > { %1090 = shalt.err (!%p1087_p5)
}
 0x1c0   : > { %s1192_s17 = smov 128   ;;  %s1193_s18 = smov 8  }
 0x1c1   : > { %922 = dma.vmem_to_hbm [thread:$0]  (%p1301_p12), %s690_s29, 2048, %s692_s12, %s677_s13, %s1192_s17, %s1192_s17, %s1193_s18  }
 0x1c2 PF: > { %p933_p6 = scmp.ge.s32.totalorder %s1185_s25, 2  ;;  %s706_s21 = sand.u32 1, %s1145_s15  }
 0x1c3   : > { %s707_s26 = scalar_lea.sflag [#allocation5], %s706_s21 }
 0x1c4   : > { %p929_p8 = pnand %p933_p6, %p1314_p2 }
 0x1c6   : > { %p930_p3 = pneg %p929_p8 }
 0x1c8   : > { %1140 = dma.done.wait (%p930_p3), %s707_s26, 2048  }
 0x1c9   : > { %1142 = vsyncadd (%p930_p3), %s707_s26, 4294965248  ;;  %s20_s25 = sadd.s32 1, %s1185_s25   ;;  %s1499_s5 = sld [smem:[#allocation9_spill]] }
 0x1ca   : > { %p17_p9 = scmp.ge.s32.totalorder %s20_s25, 11   ;;  %s1500_s17 = sld [smem:[#allocation13_spill]] }
 0x1cb   : > { %s1501_s11 = sld [smem:[#allocation10_spill]]  ;;  %s1505_s15 = smov %s1149_s16 }
 0x1cc   : > { %s1502_s20 = sld [smem:[#allocation14_spill]]  ;;  %s1507_s18 = smov %s1161_s19 }
 0x1cd   : > { %s1503_s9 = sld [smem:[#allocation11_spill]]  ;;  %s1509_s21 = smov %s1177_s23 }
 0x1ce   : > { %s1504_s28 = sld [smem:[#allocation12_spill]]  ;;  %s1510_s22 = smov %s1181_s24 }
 0x1cf   : > { %s1506_s16 = smov %s1499_s5 }
 0x1d0   :  { %19 = sbr.rel (!%p17_p9) target bundleno = 9 (0x9), region = 93 }
 0x1d1   : > { %s1508_s19 = smov %s1501_s11 }
 0x1d3   : > { %s1511_s23 = smov %s1503_s9 }
 0x1d4   : > { %s1512_s24 = smov %s1504_s28 }
 0x1d5   :  { %713 = vsyncpa [#allocation4], 1 }
 0x1d6   :  { %715 = vsyncpa [#allocation4 + $0x1], 1 }
 0x1d7   :  { %716 = vsyncpa [#allocation5], 1 }
 0x1d8   :  { %718 = vsyncpa [#allocation5 + $0x1], 1 }

</bundles_post_ra>
